<compile_context>
chip_gen: v6e
topology: v6e:2x2x1
jax: 0.10.0
libtpu: 0.0.40
codegen_flags: <defaults>
</compile_context>

<pallas_src>
import jax
import jax.numpy as jnp
from jax.experimental import pallas as pl
from jax.experimental.pallas import tpu as pltpu


def _word_embedding_kernel(ids_ref, wemb_hbm, pemb_ref, gamma_ref, beta_ref,
                           out_ref, gather_buf, gather_sem):
    # ids_ref    : [B, S] int32, SMEM (scalar-prefetch)
    # wemb_hbm   : [V, D] word-embedding table, HBM-resident (pl.ANY)
    # pemb_ref   : [S, D] positional-embedding rows 0..S-1, VMEM
    # gamma/beta : [1, D] LayerNorm affine params, VMEM
    # out_ref    : [S, D] output block for batch row b (leading dim squeezed)
    # gather_buf : [S, D] VMEM scratch for gathered token embeddings
    # gather_sem : [S]    DMA semaphores, one per gathered row
    b = pl.program_id(0)
    S, D = gather_buf.shape

    # --- token-embedding gather: one row DMA per token, all started before
    #     any wait so the DMA engine has S descriptors in flight ---
    copies = []
    for s in range(S):                       # S is static (block shape)
        idx = ids_ref[b, s]                  # SMEM scalar read (scalar unit)
        cp = pltpu.make_async_copy(wemb_hbm.at[pl.ds(idx, 1), :],
                                   gather_buf.at[pl.ds(s, 1), :],
                                   gather_sem.at[s])
        cp.start()
        copies.append(cp)
    for cp in copies:
        cp.wait()

    # --- token + positional embedding (positions are 0..S-1 for this row) ---
    x = gather_buf[...].astype(jnp.float32) + pemb_ref[...].astype(jnp.float32)

    # --- LayerNorm over D: one-pass sum / sum-of-squares, f32 stats ---
    inv_d = jnp.float32(1.0 / D)
    mean = jnp.sum(x, axis=-1, keepdims=True) * inv_d
    ex2 = jnp.sum(x * x, axis=-1, keepdims=True) * inv_d
    var = ex2 - mean * mean
    y = (x - mean) * jax.lax.rsqrt(var + jnp.float32(1e-5))
    y = y * gamma_ref[...].astype(jnp.float32) + beta_ref[...].astype(jnp.float32)

    # TODO(synk): nn.Dropout(0.1) in training mode is omitted; eval-mode
    # dropout is identity, which is what we implement.
    out_ref[...] = y.astype(out_ref.dtype)


def word_embedding_forward(input_ids, attention_mask, sentence_lengths,
                           word_table, pos_table, gamma, beta):
    """Mirrors WordEmbedding.forward: returns the features dict with
    'token_embeddings' of shape [B, S, D]."""
    B, S = input_ids.shape
    V, D = word_table.shape

    # Clamp ids so the in-kernel DMA gather can never read out of bounds
    # (Pallas does not bounds-check DMAs; nn.Embedding would raise instead).
    ids = jnp.clip(input_ids.astype(jnp.int32), 0, V - 1)

    grid_spec = pltpu.PrefetchScalarGridSpec(
        num_scalar_prefetch=1,                      # input_ids -> SMEM
        grid=(B,),                                  # one program per batch row
        in_specs=[
            pl.BlockSpec(memory_space=pl.ANY),                    # word table stays in HBM
            pl.BlockSpec((S, D), lambda b, ids: (0, 0)),          # pos rows [0:S]
            pl.BlockSpec((1, D), lambda b, ids: (0, 0)),          # gamma
            pl.BlockSpec((1, D), lambda b, ids: (0, 0)),          # beta
        ],
        out_specs=pl.BlockSpec((None, S, D), lambda b, ids: (b, 0, 0)),
        scratch_shapes=[
            pltpu.VMEM((S, D), word_table.dtype),   # gather buffer (bf16 tables also supported)
            pltpu.SemaphoreType.DMA((S,)),
        ],
    )

    out = pl.pallas_call(
        _word_embedding_kernel,
        out_shape=jax.ShapeDtypeStruct((B, S, D), jnp.float32),
        grid_spec=grid_spec,
        compiler_params=pltpu.CompilerParams(
            dimension_semantics=("parallel",)),     # batch rows are independent
    )(ids,                      # scalar-prefetch arg
      word_table,               # HBM
      pos_table[:S],            # positions arange(S) -> static slice (glue)
      gamma.reshape(1, D),
      beta.reshape(1, D))

    return {
        'input_ids': input_ids,
        'attention_mask': attention_mask,
        'sentence_lengths': sentence_lengths,
        'token_embeddings': out,
        'cls_token_embeddings': None,
    }


if __name__ == "__main__":
    # Small, module-consistent shapes. D=128 keeps the output lane-dense.
    B, S = 2, 8                 # batch, max sentence length in this batch
    V, D = 64, 128              # vocab_size, word_embedding_dim
    MAX_SENT_LEN = 16           # pos_embed table rows

    key = jax.random.PRNGKey(0)
    k_ids, k_w, k_p, k_g, k_b = jax.random.split(key, 5)

    input_ids = jax.random.randint(k_ids, (B, S), 0, V, dtype=jnp.int32)
    sentence_lengths = jnp.full((B,), S, dtype=jnp.int32)
    attention_mask = jnp.ones((B, S), dtype=jnp.int32)

    # Deterministic synthetic parameters (nn.Embedding ~ N(0,1); LayerNorm affine).
    word_table = jax.random.normal(k_w, (V, D), dtype=jnp.float32)
    pos_table = jax.random.normal(k_p, (MAX_SENT_LEN, D), dtype=jnp.float32)
    gamma = jnp.ones((D,), dtype=jnp.float32)
    beta = jnp.zeros((D,), dtype=jnp.float32)

    features = word_embedding_forward(input_ids, attention_mask,
                                      sentence_lengths,
                                      word_table, pos_table, gamma, beta)
    tok_emb = jax.block_until_ready(features['token_embeddings'])

    # Pure-JAX reference check (eval-mode: dropout is identity).
    ref = word_table[input_ids] + pos_table[jnp.arange(S)][None]
    mean = ref.mean(-1, keepdims=True)
    var = ((ref - mean) ** 2).mean(-1, keepdims=True)
    ref = (ref - mean) / jnp.sqrt(var + 1e-5) * gamma + beta
    assert tok_emb.shape == (B, S, D)
    assert jnp.allclose(tok_emb, ref, atol=1e-5, rtol=1e-5)

    print("KERNEL_OK")
</pallas_src>

<mosaic_0001>
module attributes {stable_mosaic.version = 11 : i64} {
  func.func @_word_embedding_kernel(%arg0: i32, %arg1: memref<2x8xi32, #tpu.memory_space<smem>>, %arg2: memref<64x128xf32, #tpu.memory_space<any>>, %arg3: memref<8x128xf32, #tpu.memory_space<vmem>>, %arg4: memref<1x128xf32, #tpu.memory_space<vmem>>, %arg5: memref<1x128xf32, #tpu.memory_space<vmem>>, %arg6: memref<1x8x128xf32, #tpu.memory_space<vmem>>, %arg7: memref<8x128xf32, #tpu.memory_space<vmem>>, %arg8: memref<8x!tpu.dma_semaphore, #tpu.memory_space<semaphore_mem>>) attributes {dimension_semantics = [#tpu.dimension_semantics<parallel>], iteration_bounds = array<i64: 2>, scalar_prefetch = 1 : i64, scratch_operands = 2 : i64, tpu.core_type = #tpu.core_type<tc>, window_params = [{}, {pipeline_mode = #tpu.pipeline_mode<synchronous>, transform_indices = @transform_1, window_bounds = array<i64: 8, 128>}, {pipeline_mode = #tpu.pipeline_mode<synchronous>, transform_indices = @transform_2, window_bounds = array<i64: 1, 128>}, {pipeline_mode = #tpu.pipeline_mode<synchronous>, transform_indices = @transform_3, window_bounds = array<i64: 1, 128>}, {transform_indices = @transform_4, window_bounds = array<i64: 1, 8, 128>}]} {
    %0 = arith.index_cast %arg0 : i32 to index
    %c0 = arith.constant 0 : index
    %1 = memref.load %arg1[%0, %c0] : memref<2x8xi32, #tpu.memory_space<smem>>
    %c0_i32 = arith.constant 0 : i32
    %c0_i32_0 = arith.constant 0 : i32
    %2 = tpu.memref_slice %arg2[%1, %c0_i32_0] : memref<64x128xf32, #tpu.memory_space<any>> -> memref<1x128xf32, #tpu.memory_space<any>>
    %c0_i32_1 = arith.constant 0 : i32
    %c0_i32_2 = arith.constant 0 : i32
    %3 = tpu.memref_slice %arg7[%c0_i32_1, %c0_i32_2] : memref<8x128xf32, #tpu.memory_space<vmem>> -> memref<1x128xf32, #tpu.memory_space<vmem>>
    %4 = tpu.memref_slice %arg8[%c0_i32] : memref<8x!tpu.dma_semaphore, #tpu.memory_space<semaphore_mem>> -> memref<1x!tpu.dma_semaphore, #tpu.memory_space<semaphore_mem>>
    %5 = tpu.memref_squeeze %4 : memref<1x!tpu.dma_semaphore, #tpu.memory_space<semaphore_mem>> -> memref<!tpu.dma_semaphore, #tpu.memory_space<semaphore_mem>>
    tpu.enqueue_dma source(%2 : memref<1x128xf32, #tpu.memory_space<any>>) target(%3 : memref<1x128xf32, #tpu.memory_space<vmem>>) target_semaphore(%5 : memref<!tpu.dma_semaphore, #tpu.memory_space<semaphore_mem>>)
    %6 = arith.index_cast %arg0 : i32 to index
    %c1 = arith.constant 1 : index
    %7 = memref.load %arg1[%6, %c1] : memref<2x8xi32, #tpu.memory_space<smem>>
    %c1_i32 = arith.constant 1 : i32
    %c0_i32_3 = arith.constant 0 : i32
    %8 = tpu.memref_slice %arg2[%7, %c0_i32_3] : memref<64x128xf32, #tpu.memory_space<any>> -> memref<1x128xf32, #tpu.memory_space<any>>
    %c1_i32_4 = arith.constant 1 : i32
    %c0_i32_5 = arith.constant 0 : i32
    %9 = tpu.memref_slice %arg7[%c1_i32_4, %c0_i32_5] : memref<8x128xf32, #tpu.memory_space<vmem>> -> memref<1x128xf32, #tpu.memory_space<vmem>>
    %10 = tpu.memref_slice %arg8[%c1_i32] : memref<8x!tpu.dma_semaphore, #tpu.memory_space<semaphore_mem>> -> memref<1x!tpu.dma_semaphore, #tpu.memory_space<semaphore_mem>>
    %11 = tpu.memref_squeeze %10 : memref<1x!tpu.dma_semaphore, #tpu.memory_space<semaphore_mem>> -> memref<!tpu.dma_semaphore, #tpu.memory_space<semaphore_mem>>
    tpu.enqueue_dma source(%8 : memref<1x128xf32, #tpu.memory_space<any>>) target(%9 : memref<1x128xf32, #tpu.memory_space<vmem>>) target_semaphore(%11 : memref<!tpu.dma_semaphore, #tpu.memory_space<semaphore_mem>>)
    %12 = arith.index_cast %arg0 : i32 to index
    %c2 = arith.constant 2 : index
    %13 = memref.load %arg1[%12, %c2] : memref<2x8xi32, #tpu.memory_space<smem>>
    %c2_i32 = arith.constant 2 : i32
    %c0_i32_6 = arith.constant 0 : i32
    %14 = tpu.memref_slice %arg2[%13, %c0_i32_6] : memref<64x128xf32, #tpu.memory_space<any>> -> memref<1x128xf32, #tpu.memory_space<any>>
    %c2_i32_7 = arith.constant 2 : i32
    %c0_i32_8 = arith.constant 0 : i32
    %15 = tpu.memref_slice %arg7[%c2_i32_7, %c0_i32_8] : memref<8x128xf32, #tpu.memory_space<vmem>> -> memref<1x128xf32, #tpu.memory_space<vmem>>
    %16 = tpu.memref_slice %arg8[%c2_i32] : memref<8x!tpu.dma_semaphore, #tpu.memory_space<semaphore_mem>> -> memref<1x!tpu.dma_semaphore, #tpu.memory_space<semaphore_mem>>
    %17 = tpu.memref_squeeze %16 : memref<1x!tpu.dma_semaphore, #tpu.memory_space<semaphore_mem>> -> memref<!tpu.dma_semaphore, #tpu.memory_space<semaphore_mem>>
    tpu.enqueue_dma source(%14 : memref<1x128xf32, #tpu.memory_space<any>>) target(%15 : memref<1x128xf32, #tpu.memory_space<vmem>>) target_semaphore(%17 : memref<!tpu.dma_semaphore, #tpu.memory_space<semaphore_mem>>)
    %18 = arith.index_cast %arg0 : i32 to index
    %c3 = arith.constant 3 : index
    %19 = memref.load %arg1[%18, %c3] : memref<2x8xi32, #tpu.memory_space<smem>>
    %c3_i32 = arith.constant 3 : i32
    %c0_i32_9 = arith.constant 0 : i32
    %20 = tpu.memref_slice %arg2[%19, %c0_i32_9] : memref<64x128xf32, #tpu.memory_space<any>> -> memref<1x128xf32, #tpu.memory_space<any>>
    %c3_i32_10 = arith.constant 3 : i32
    %c0_i32_11 = arith.constant 0 : i32
    %21 = tpu.memref_slice %arg7[%c3_i32_10, %c0_i32_11] : memref<8x128xf32, #tpu.memory_space<vmem>> -> memref<1x128xf32, #tpu.memory_space<vmem>>
    %22 = tpu.memref_slice %arg8[%c3_i32] : memref<8x!tpu.dma_semaphore, #tpu.memory_space<semaphore_mem>> -> memref<1x!tpu.dma_semaphore, #tpu.memory_space<semaphore_mem>>
    %23 = tpu.memref_squeeze %22 : memref<1x!tpu.dma_semaphore, #tpu.memory_space<semaphore_mem>> -> memref<!tpu.dma_semaphore, #tpu.memory_space<semaphore_mem>>
    tpu.enqueue_dma source(%20 : memref<1x128xf32, #tpu.memory_space<any>>) target(%21 : memref<1x128xf32, #tpu.memory_space<vmem>>) target_semaphore(%23 : memref<!tpu.dma_semaphore, #tpu.memory_space<semaphore_mem>>)
    %24 = arith.index_cast %arg0 : i32 to index
    %c4 = arith.constant 4 : index
    %25 = memref.load %arg1[%24, %c4] : memref<2x8xi32, #tpu.memory_space<smem>>
    %c4_i32 = arith.constant 4 : i32
    %c0_i32_12 = arith.constant 0 : i32
    %26 = tpu.memref_slice %arg2[%25, %c0_i32_12] : memref<64x128xf32, #tpu.memory_space<any>> -> memref<1x128xf32, #tpu.memory_space<any>>
    %c4_i32_13 = arith.constant 4 : i32
    %c0_i32_14 = arith.constant 0 : i32
    %27 = tpu.memref_slice %arg7[%c4_i32_13, %c0_i32_14] : memref<8x128xf32, #tpu.memory_space<vmem>> -> memref<1x128xf32, #tpu.memory_space<vmem>>
    %28 = tpu.memref_slice %arg8[%c4_i32] : memref<8x!tpu.dma_semaphore, #tpu.memory_space<semaphore_mem>> -> memref<1x!tpu.dma_semaphore, #tpu.memory_space<semaphore_mem>>
    %29 = tpu.memref_squeeze %28 : memref<1x!tpu.dma_semaphore, #tpu.memory_space<semaphore_mem>> -> memref<!tpu.dma_semaphore, #tpu.memory_space<semaphore_mem>>
    tpu.enqueue_dma source(%26 : memref<1x128xf32, #tpu.memory_space<any>>) target(%27 : memref<1x128xf32, #tpu.memory_space<vmem>>) target_semaphore(%29 : memref<!tpu.dma_semaphore, #tpu.memory_space<semaphore_mem>>)
    %30 = arith.index_cast %arg0 : i32 to index
    %c5 = arith.constant 5 : index
    %31 = memref.load %arg1[%30, %c5] : memref<2x8xi32, #tpu.memory_space<smem>>
    %c5_i32 = arith.constant 5 : i32
    %c0_i32_15 = arith.constant 0 : i32
    %32 = tpu.memref_slice %arg2[%31, %c0_i32_15] : memref<64x128xf32, #tpu.memory_space<any>> -> memref<1x128xf32, #tpu.memory_space<any>>
    %c5_i32_16 = arith.constant 5 : i32
    %c0_i32_17 = arith.constant 0 : i32
    %33 = tpu.memref_slice %arg7[%c5_i32_16, %c0_i32_17] : memref<8x128xf32, #tpu.memory_space<vmem>> -> memref<1x128xf32, #tpu.memory_space<vmem>>
    %34 = tpu.memref_slice %arg8[%c5_i32] : memref<8x!tpu.dma_semaphore, #tpu.memory_space<semaphore_mem>> -> memref<1x!tpu.dma_semaphore, #tpu.memory_space<semaphore_mem>>
    %35 = tpu.memref_squeeze %34 : memref<1x!tpu.dma_semaphore, #tpu.memory_space<semaphore_mem>> -> memref<!tpu.dma_semaphore, #tpu.memory_space<semaphore_mem>>
    tpu.enqueue_dma source(%32 : memref<1x128xf32, #tpu.memory_space<any>>) target(%33 : memref<1x128xf32, #tpu.memory_space<vmem>>) target_semaphore(%35 : memref<!tpu.dma_semaphore, #tpu.memory_space<semaphore_mem>>)
    %36 = arith.index_cast %arg0 : i32 to index
    %c6 = arith.constant 6 : index
    %37 = memref.load %arg1[%36, %c6] : memref<2x8xi32, #tpu.memory_space<smem>>
    %c6_i32 = arith.constant 6 : i32
    %c0_i32_18 = arith.constant 0 : i32
    %38 = tpu.memref_slice %arg2[%37, %c0_i32_18] : memref<64x128xf32, #tpu.memory_space<any>> -> memref<1x128xf32, #tpu.memory_space<any>>
    %c6_i32_19 = arith.constant 6 : i32
    %c0_i32_20 = arith.constant 0 : i32
    %39 = tpu.memref_slice %arg7[%c6_i32_19, %c0_i32_20] : memref<8x128xf32, #tpu.memory_space<vmem>> -> memref<1x128xf32, #tpu.memory_space<vmem>>
    %40 = tpu.memref_slice %arg8[%c6_i32] : memref<8x!tpu.dma_semaphore, #tpu.memory_space<semaphore_mem>> -> memref<1x!tpu.dma_semaphore, #tpu.memory_space<semaphore_mem>>
    %41 = tpu.memref_squeeze %40 : memref<1x!tpu.dma_semaphore, #tpu.memory_space<semaphore_mem>> -> memref<!tpu.dma_semaphore, #tpu.memory_space<semaphore_mem>>
    tpu.enqueue_dma source(%38 : memref<1x128xf32, #tpu.memory_space<any>>) target(%39 : memref<1x128xf32, #tpu.memory_space<vmem>>) target_semaphore(%41 : memref<!tpu.dma_semaphore, #tpu.memory_space<semaphore_mem>>)
    %42 = arith.index_cast %arg0 : i32 to index
    %c7 = arith.constant 7 : index
    %43 = memref.load %arg1[%42, %c7] : memref<2x8xi32, #tpu.memory_space<smem>>
    %c7_i32 = arith.constant 7 : i32
    %c0_i32_21 = arith.constant 0 : i32
    %44 = tpu.memref_slice %arg2[%43, %c0_i32_21] : memref<64x128xf32, #tpu.memory_space<any>> -> memref<1x128xf32, #tpu.memory_space<any>>
    %c7_i32_22 = arith.constant 7 : i32
    %c0_i32_23 = arith.constant 0 : i32
    %45 = tpu.memref_slice %arg7[%c7_i32_22, %c0_i32_23] : memref<8x128xf32, #tpu.memory_space<vmem>> -> memref<1x128xf32, #tpu.memory_space<vmem>>
    %46 = tpu.memref_slice %arg8[%c7_i32] : memref<8x!tpu.dma_semaphore, #tpu.memory_space<semaphore_mem>> -> memref<1x!tpu.dma_semaphore, #tpu.memory_space<semaphore_mem>>
    %47 = tpu.memref_squeeze %46 : memref<1x!tpu.dma_semaphore, #tpu.memory_space<semaphore_mem>> -> memref<!tpu.dma_semaphore, #tpu.memory_space<semaphore_mem>>
    tpu.enqueue_dma source(%44 : memref<1x128xf32, #tpu.memory_space<any>>) target(%45 : memref<1x128xf32, #tpu.memory_space<vmem>>) target_semaphore(%47 : memref<!tpu.dma_semaphore, #tpu.memory_space<semaphore_mem>>)
    %c0_i32_24 = arith.constant 0 : i32
    %c0_i32_25 = arith.constant 0 : i32
    %48 = tpu.memref_slice %arg2[%1, %c0_i32_25] : memref<64x128xf32, #tpu.memory_space<any>> -> memref<1x128xf32, #tpu.memory_space<any>>
    %c0_i32_26 = arith.constant 0 : i32
    %c0_i32_27 = arith.constant 0 : i32
    %49 = tpu.memref_slice %arg7[%c0_i32_26, %c0_i32_27] : memref<8x128xf32, #tpu.memory_space<vmem>> -> memref<1x128xf32, #tpu.memory_space<vmem>>
    %50 = tpu.memref_slice %arg8[%c0_i32_24] : memref<8x!tpu.dma_semaphore, #tpu.memory_space<semaphore_mem>> -> memref<1x!tpu.dma_semaphore, #tpu.memory_space<semaphore_mem>>
    %51 = tpu.memref_squeeze %50 : memref<1x!tpu.dma_semaphore, #tpu.memory_space<semaphore_mem>> -> memref<!tpu.dma_semaphore, #tpu.memory_space<semaphore_mem>>
    tpu.wait_dma2 semaphore(%51 : memref<!tpu.dma_semaphore, #tpu.memory_space<semaphore_mem>>) src(%48 : memref<1x128xf32, #tpu.memory_space<any>>) dst(%49 : memref<1x128xf32, #tpu.memory_space<vmem>>)
    %c1_i32_28 = arith.constant 1 : i32
    %c0_i32_29 = arith.constant 0 : i32
    %52 = tpu.memref_slice %arg2[%7, %c0_i32_29] : memref<64x128xf32, #tpu.memory_space<any>> -> memref<1x128xf32, #tpu.memory_space<any>>
    %c1_i32_30 = arith.constant 1 : i32
    %c0_i32_31 = arith.constant 0 : i32
    %53 = tpu.memref_slice %arg7[%c1_i32_30, %c0_i32_31] : memref<8x128xf32, #tpu.memory_space<vmem>> -> memref<1x128xf32, #tpu.memory_space<vmem>>
    %54 = tpu.memref_slice %arg8[%c1_i32_28] : memref<8x!tpu.dma_semaphore, #tpu.memory_space<semaphore_mem>> -> memref<1x!tpu.dma_semaphore, #tpu.memory_space<semaphore_mem>>
    %55 = tpu.memref_squeeze %54 : memref<1x!tpu.dma_semaphore, #tpu.memory_space<semaphore_mem>> -> memref<!tpu.dma_semaphore, #tpu.memory_space<semaphore_mem>>
    tpu.wait_dma2 semaphore(%55 : memref<!tpu.dma_semaphore, #tpu.memory_space<semaphore_mem>>) src(%52 : memref<1x128xf32, #tpu.memory_space<any>>) dst(%53 : memref<1x128xf32, #tpu.memory_space<vmem>>)
    %c2_i32_32 = arith.constant 2 : i32
    %c0_i32_33 = arith.constant 0 : i32
    %56 = tpu.memref_slice %arg2[%13, %c0_i32_33] : memref<64x128xf32, #tpu.memory_space<any>> -> memref<1x128xf32, #tpu.memory_space<any>>
    %c2_i32_34 = arith.constant 2 : i32
    %c0_i32_35 = arith.constant 0 : i32
    %57 = tpu.memref_slice %arg7[%c2_i32_34, %c0_i32_35] : memref<8x128xf32, #tpu.memory_space<vmem>> -> memref<1x128xf32, #tpu.memory_space<vmem>>
    %58 = tpu.memref_slice %arg8[%c2_i32_32] : memref<8x!tpu.dma_semaphore, #tpu.memory_space<semaphore_mem>> -> memref<1x!tpu.dma_semaphore, #tpu.memory_space<semaphore_mem>>
    %59 = tpu.memref_squeeze %58 : memref<1x!tpu.dma_semaphore, #tpu.memory_space<semaphore_mem>> -> memref<!tpu.dma_semaphore, #tpu.memory_space<semaphore_mem>>
    tpu.wait_dma2 semaphore(%59 : memref<!tpu.dma_semaphore, #tpu.memory_space<semaphore_mem>>) src(%56 : memref<1x128xf32, #tpu.memory_space<any>>) dst(%57 : memref<1x128xf32, #tpu.memory_space<vmem>>)
    %c3_i32_36 = arith.constant 3 : i32
    %c0_i32_37 = arith.constant 0 : i32
    %60 = tpu.memref_slice %arg2[%19, %c0_i32_37] : memref<64x128xf32, #tpu.memory_space<any>> -> memref<1x128xf32, #tpu.memory_space<any>>
    %c3_i32_38 = arith.constant 3 : i32
    %c0_i32_39 = arith.constant 0 : i32
    %61 = tpu.memref_slice %arg7[%c3_i32_38, %c0_i32_39] : memref<8x128xf32, #tpu.memory_space<vmem>> -> memref<1x128xf32, #tpu.memory_space<vmem>>
    %62 = tpu.memref_slice %arg8[%c3_i32_36] : memref<8x!tpu.dma_semaphore, #tpu.memory_space<semaphore_mem>> -> memref<1x!tpu.dma_semaphore, #tpu.memory_space<semaphore_mem>>
    %63 = tpu.memref_squeeze %62 : memref<1x!tpu.dma_semaphore, #tpu.memory_space<semaphore_mem>> -> memref<!tpu.dma_semaphore, #tpu.memory_space<semaphore_mem>>
    tpu.wait_dma2 semaphore(%63 : memref<!tpu.dma_semaphore, #tpu.memory_space<semaphore_mem>>) src(%60 : memref<1x128xf32, #tpu.memory_space<any>>) dst(%61 : memref<1x128xf32, #tpu.memory_space<vmem>>)
    %c4_i32_40 = arith.constant 4 : i32
    %c0_i32_41 = arith.constant 0 : i32
    %64 = tpu.memref_slice %arg2[%25, %c0_i32_41] : memref<64x128xf32, #tpu.memory_space<any>> -> memref<1x128xf32, #tpu.memory_space<any>>
    %c4_i32_42 = arith.constant 4 : i32
    %c0_i32_43 = arith.constant 0 : i32
    %65 = tpu.memref_slice %arg7[%c4_i32_42, %c0_i32_43] : memref<8x128xf32, #tpu.memory_space<vmem>> -> memref<1x128xf32, #tpu.memory_space<vmem>>
    %66 = tpu.memref_slice %arg8[%c4_i32_40] : memref<8x!tpu.dma_semaphore, #tpu.memory_space<semaphore_mem>> -> memref<1x!tpu.dma_semaphore, #tpu.memory_space<semaphore_mem>>
    %67 = tpu.memref_squeeze %66 : memref<1x!tpu.dma_semaphore, #tpu.memory_space<semaphore_mem>> -> memref<!tpu.dma_semaphore, #tpu.memory_space<semaphore_mem>>
    tpu.wait_dma2 semaphore(%67 : memref<!tpu.dma_semaphore, #tpu.memory_space<semaphore_mem>>) src(%64 : memref<1x128xf32, #tpu.memory_space<any>>) dst(%65 : memref<1x128xf32, #tpu.memory_space<vmem>>)
    %c5_i32_44 = arith.constant 5 : i32
    %c0_i32_45 = arith.constant 0 : i32
    %68 = tpu.memref_slice %arg2[%31, %c0_i32_45] : memref<64x128xf32, #tpu.memory_space<any>> -> memref<1x128xf32, #tpu.memory_space<any>>
    %c5_i32_46 = arith.constant 5 : i32
    %c0_i32_47 = arith.constant 0 : i32
    %69 = tpu.memref_slice %arg7[%c5_i32_46, %c0_i32_47] : memref<8x128xf32, #tpu.memory_space<vmem>> -> memref<1x128xf32, #tpu.memory_space<vmem>>
    %70 = tpu.memref_slice %arg8[%c5_i32_44] : memref<8x!tpu.dma_semaphore, #tpu.memory_space<semaphore_mem>> -> memref<1x!tpu.dma_semaphore, #tpu.memory_space<semaphore_mem>>
    %71 = tpu.memref_squeeze %70 : memref<1x!tpu.dma_semaphore, #tpu.memory_space<semaphore_mem>> -> memref<!tpu.dma_semaphore, #tpu.memory_space<semaphore_mem>>
    tpu.wait_dma2 semaphore(%71 : memref<!tpu.dma_semaphore, #tpu.memory_space<semaphore_mem>>) src(%68 : memref<1x128xf32, #tpu.memory_space<any>>) dst(%69 : memref<1x128xf32, #tpu.memory_space<vmem>>)
    %c6_i32_48 = arith.constant 6 : i32
    %c0_i32_49 = arith.constant 0 : i32
    %72 = tpu.memref_slice %arg2[%37, %c0_i32_49] : memref<64x128xf32, #tpu.memory_space<any>> -> memref<1x128xf32, #tpu.memory_space<any>>
    %c6_i32_50 = arith.constant 6 : i32
    %c0_i32_51 = arith.constant 0 : i32
    %73 = tpu.memref_slice %arg7[%c6_i32_50, %c0_i32_51] : memref<8x128xf32, #tpu.memory_space<vmem>> -> memref<1x128xf32, #tpu.memory_space<vmem>>
    %74 = tpu.memref_slice %arg8[%c6_i32_48] : memref<8x!tpu.dma_semaphore, #tpu.memory_space<semaphore_mem>> -> memref<1x!tpu.dma_semaphore, #tpu.memory_space<semaphore_mem>>
    %75 = tpu.memref_squeeze %74 : memref<1x!tpu.dma_semaphore, #tpu.memory_space<semaphore_mem>> -> memref<!tpu.dma_semaphore, #tpu.memory_space<semaphore_mem>>
    tpu.wait_dma2 semaphore(%75 : memref<!tpu.dma_semaphore, #tpu.memory_space<semaphore_mem>>) src(%72 : memref<1x128xf32, #tpu.memory_space<any>>) dst(%73 : memref<1x128xf32, #tpu.memory_space<vmem>>)
    %c7_i32_52 = arith.constant 7 : i32
    %c0_i32_53 = arith.constant 0 : i32
    %76 = tpu.memref_slice %arg2[%43, %c0_i32_53] : memref<64x128xf32, #tpu.memory_space<any>> -> memref<1x128xf32, #tpu.memory_space<any>>
    %c7_i32_54 = arith.constant 7 : i32
    %c0_i32_55 = arith.constant 0 : i32
    %77 = tpu.memref_slice %arg7[%c7_i32_54, %c0_i32_55] : memref<8x128xf32, #tpu.memory_space<vmem>> -> memref<1x128xf32, #tpu.memory_space<vmem>>
    %78 = tpu.memref_slice %arg8[%c7_i32_52] : memref<8x!tpu.dma_semaphore, #tpu.memory_space<semaphore_mem>> -> memref<1x!tpu.dma_semaphore, #tpu.memory_space<semaphore_mem>>
    %79 = tpu.memref_squeeze %78 : memref<1x!tpu.dma_semaphore, #tpu.memory_space<semaphore_mem>> -> memref<!tpu.dma_semaphore, #tpu.memory_space<semaphore_mem>>
    tpu.wait_dma2 semaphore(%79 : memref<!tpu.dma_semaphore, #tpu.memory_space<semaphore_mem>>) src(%76 : memref<1x128xf32, #tpu.memory_space<any>>) dst(%77 : memref<1x128xf32, #tpu.memory_space<vmem>>)
    %c0_56 = arith.constant 0 : index
    %c0_57 = arith.constant 0 : index
    %80 = vector.load %arg7[%c0_56, %c0_57] : memref<8x128xf32, #tpu.memory_space<vmem>>, vector<8x128xf32>
    %c0_58 = arith.constant 0 : index
    %c0_59 = arith.constant 0 : index
    %81 = vector.load %arg3[%c0_58, %c0_59] : memref<8x128xf32, #tpu.memory_space<vmem>>, vector<8x128xf32>
    %82 = arith.addf %80, %81 : vector<8x128xf32>
    %cst = arith.constant dense<0.000000e+00> : vector<8xf32>
    %83 = vector.multi_reduction <add>, %82, %cst [1] : vector<8x128xf32> to vector<8xf32>
    %84 = vector.shape_cast %83 : vector<8xf32> to vector<8x1xf32>
    %cst_60 = arith.constant 7.812500e-03 : f32
    %85 = vector.broadcast %cst_60 : f32 to vector<8x1xf32>
    %86 = arith.mulf %84, %85 : vector<8x1xf32>
    %87 = arith.mulf %82, %82 : vector<8x128xf32>
    %cst_61 = arith.constant dense<0.000000e+00> : vector<8xf32>
    %88 = vector.multi_reduction <add>, %87, %cst_61 [1] : vector<8x128xf32> to vector<8xf32>
    %89 = vector.shape_cast %88 : vector<8xf32> to vector<8x1xf32>
    %cst_62 = arith.constant 7.812500e-03 : f32
    %90 = vector.broadcast %cst_62 : f32 to vector<8x1xf32>
    %91 = arith.mulf %89, %90 : vector<8x1xf32>
    %92 = arith.mulf %86, %86 : vector<8x1xf32>
    %93 = arith.subf %91, %92 : vector<8x1xf32>
    %94 = vector.broadcast %86 : vector<8x1xf32> to vector<8x128xf32>
    %95 = arith.subf %82, %94 : vector<8x128xf32>
    %cst_63 = arith.constant 9.99999974E-6 : f32
    %96 = vector.broadcast %cst_63 : f32 to vector<8x1xf32>
    %97 = arith.addf %93, %96 : vector<8x1xf32>
    %98 = math.rsqrt %97 : vector<8x1xf32>
    %99 = vector.broadcast %98 : vector<8x1xf32> to vector<8x128xf32>
    %100 = arith.mulf %95, %99 : vector<8x128xf32>
    %c0_64 = arith.constant 0 : index
    %c0_65 = arith.constant 0 : index
    %101 = vector.load %arg4[%c0_64, %c0_65] : memref<1x128xf32, #tpu.memory_space<vmem>>, vector<1x128xf32>
    %102 = vector.broadcast %101 : vector<1x128xf32> to vector<8x128xf32>
    %103 = arith.mulf %100, %102 : vector<8x128xf32>
    %c0_66 = arith.constant 0 : index
    %c0_67 = arith.constant 0 : index
    %104 = vector.load %arg5[%c0_66, %c0_67] : memref<1x128xf32, #tpu.memory_space<vmem>>, vector<1x128xf32>
    %105 = vector.broadcast %104 : vector<1x128xf32> to vector<8x128xf32>
    %106 = arith.addf %103, %105 : vector<8x128xf32>
    %c0_68 = arith.constant 0 : index
    %c0_69 = arith.constant 0 : index
    %c0_70 = arith.constant 0 : index
    %107 = vector.load %arg6[%c0_68, %c0_69, %c0_70] : memref<1x8x128xf32, #tpu.memory_space<vmem>>, vector<1x8x128xf32>
    %108 = vector.shape_cast %107 : vector<1x8x128xf32> to vector<8x128xf32>
    %109 = vector.shape_cast %106 : vector<8x128xf32> to vector<1x8x128xf32>
    tpu.vector_store %arg6[%c0_68, %c0_69, %c0_70], %109 {strides = array<i32>} : memref<1x8x128xf32, #tpu.memory_space<vmem>>, vector<1x8x128xf32>,
    return
  }
  func.func @transform_1(%arg0: i32, %arg1: memref<2x8xi32, #tpu.memory_space<smem>>) -> (i32, i32) {
    %c0_i32 = arith.constant 0 : i32
    %c0_i32_0 = arith.constant 0 : i32
    %c0_i32_1 = arith.constant 0 : i32
    return %c0_i32, %c0_i32_0 : i32, i32
  }
  func.func @transform_2(%arg0: i32, %arg1: memref<2x8xi32, #tpu.memory_space<smem>>) -> (i32, i32) {
    %c0_i32 = arith.constant 0 : i32
    %c0_i32_0 = arith.constant 0 : i32
    %c0_i32_1 = arith.constant 0 : i32
    return %c0_i32, %c0_i32_0 : i32, i32
  }
  func.func @transform_3(%arg0: i32, %arg1: memref<2x8xi32, #tpu.memory_space<smem>>) -> (i32, i32) {
    %c0_i32 = arith.constant 0 : i32
    %c0_i32_0 = arith.constant 0 : i32
    %c0_i32_1 = arith.constant 0 : i32
    return %c0_i32, %c0_i32_0 : i32, i32
  }
  func.func @transform_4(%arg0: i32, %arg1: memref<2x8xi32, #tpu.memory_space<smem>>) -> (i32, i32, i32) {
    %c0_i32 = arith.constant 0 : i32
    %c0_i32_0 = arith.constant 0 : i32
    %c0_i32_1 = arith.constant 0 : i32
    return %arg0, %c0_i32, %c0_i32_0 : i32, i32, i32
  }
}

</mosaic_0001>

<bundles_post_ra>
// kernel: tpu_custom_call.1
= control target key start
LH: loop header
LB: loop body
LE: loop exit
PB: predicated region body
PF: predicated region fallthrough
CT: control target
= control target key end

     0   :  { %s880_s18 = smov [#allocation5]   ;;  %s1165_s0 = inlined_call_operand.hbm [shape: s32[2,8], index: 0, kind: input, shape index: {}]   ;;  %s1166_s1 = inlined_call_operand.hbm [shape: f32[64,128], index: 1, kind: input, shape index: {}]   ;;  %s1167_s2 = inlined_call_operand.hbm [shape: f32[8,128], index: 2, kind: input, shape index: {}]   ;;  %s1168_s3 = inlined_call_operand.vmem [shape: f32[1,128], index: 3, kind: input, shape index: {}]   ;;  %s1169_s4 = inlined_call_operand.vmem [shape: f32[1,128], index: 4, kind: input, shape index: {}]   ;;  %s1170_s5 = inlined_call_operand.hbm [shape: f32[2,8,128], index: 5, kind: output, shape index: {}]  }
   0x1   :  { %1173 = sst [smem:[#allocation41_spill]] %s1167_s2 }
   0x2   :  { %11 = dma.hbm_to_smem %s1165_s0, 32, %s880_s18, [#allocation4] }
   0x3   :  { %838 = dma.done.wait [#allocation4], 32 }
   0x4   :  { %839 = vsyncadd [#allocation4], 4294967264 }
   0x5   :  { %13 = sfence }
   0x6   :  { %14 = vsyncpa [#allocation7], 0 }
   0x7   :  { %15 = vsyncpa [#allocation8], 0 }
   0x8   :  { %17 = vsyncpa [#allocation8 + $0x1], 0  ;;  %s924_s21 = smov 0   ;;  %s926_s22 = smov 0  }
   0x9   :  { %s928_s23 = smov 0   ;;  %s930_s24 = smov 0  }
   0xa LB: > { %1174 = sst [smem:[#allocation39_spill]] %s874_s23  ;;  %s945_s0 = sadd.s32 4294967295, %s878_s24   ;;  %s878_s24 = sphi %s930_s24, %s1186_s24   ;;  %s874_s23 = sphi %s928_s23, %s1183_s23   ;;  %s870_s22 = sphi %s926_s22, %s1185_s22   ;;  %s866_s21 = sphi %s924_s21, %s1184_s21  }
   0xb   : > { %s496_s25 = sadd.s32 4294967294, %s878_s24   ;;  %s949_s26 = sadd.s32 1, %s878_s24  }
   0xc   : > { %s93_s27 = sadd.s32 1, %s874_s23  ;;  %s90_s28 = ssub.s32 %s878_s24, %s949_s26 }
   0xd   : > { %p103_p0 = scmp.ne.s32.totalorder %s874_s23, %s870_s22  ;;  %p91_p1 = scmp.eq.s32.totalorder %s90_s28, 0 }
   0xe   : > { %p104_p2 = scmp.eq.s32.totalorder %s945_s0, 1  ;;  %p109_p3 = scmp.ne.s32.totalorder %s870_s22, %s866_s21 }
   0xf   : > { %p110_p4 = scmp.eq.s32.totalorder %s496_s25, 1  ;;  %p497_p7 = scmp.ge.s32.totalorder %s878_s24, 1 }
  0x10   : > { %s960_s29 = scalar_select %p91_p1, %s874_s23, %s93_s27  }
  0x11   : > { %p962_p5 = por %p104_p2, %p103_p0  ;;  %p966_p6 = por %p110_p4, %p109_p3 }
  0x12   : > { %1175 = sst [smem:[#allocation40_spill]] %s960_s29  ;;  %p117_p8 = scmp.lt.s32.totalorder %s878_s24, 3 }
  0x13   : > { %s1177_s6 = scalar_select %p966_p6, 1, 0 }
  0x14   : > { %p539_p9 = scmp.eq.s32.totalorder %s945_s0, 0  ;;  %p973_p10 = pnand %p497_p7, %p117_p8 }
  0x15   : > { %s881_s8 = smov [#allocation6]  }
  0x16   : > { %s130_s9 = sshll.u32 %s881_s8, 4  ;;  %p531_p11 = pneg %p973_p10  ;;  %s131_s9 = int_to_ptr.vmem [resolvable:$true] %s130_s9 }
  0x17   : > { %s605_s10 = scalar_lea.vmem %s131_s9, 128  ;;  %p613_p3 = scmp.lt.s32.totalorder %s131_s9, %s131_s9 }
  0x18   : > { %p532_p12 = pnand %p539_p9, %p531_p11  ;;  %p606_p0 = scmp.ne.s32.totalorder %s131_s9, %s605_s10 }
  0x19   : > { %p614_p4 = scmp.lt.s32.totalorder %s605_s10, %s605_s10 }
  0x1a   : > { %p596_p13 = pneg %p532_p12 }
  0x1b   : > { %p615_p6 = por %p614_p4, %p613_p3 }
  0x1c   : > { %p608_p1 = pnand %p606_p0, %p596_p13 }
  0x1e   : > { %p609_p2 = pneg %p608_p1 }
  0x20   : > { %p616_p7 = pnand %p615_p6, %p609_p2 }
  0x22   : > { %619 = shalt.err (!%p616_p7)
}
  0x23   : > { %s1179_s2 = sld [smem:[#allocation41_spill]] }
  0x25   : > { %149 = sbr.rel (%p973_p10) target bundleno = 408 (0x198), region = 32 }
  0x29   : > { %534 = dma.hbm_to_vmem [thread:$0]  (!%p532_p12), %s1179_s2, 128, %s131_s9, [#allocation7]  }
  0x2a   : > { %841 = dma.done.wait (%p539_p9), [#allocation7], 128  }
  0x2b   : > { %843 = vsyncadd (%p539_p9), [#allocation7], 4294967168  ;;  %s1171_s13 = sand.u32 1, %s870_s22   ;;  %s992_s14 = sshll.u32 %s945_s0, 7 }
  0x2c   : > { %s996_s15 = sshll.u32 %s1171_s13, 3  ;;  %s169_s16 = sld [smem:[#allocation5 + %s992_s14]] }
  0x2d   : > { %s882_s17 = smov [#allocation2]   ;;  %s183_s19 = sadd.s32 1, %s992_s14 }
  0x2e   : > { %s179_s18 = sshll.u32 %s882_s17, 4  ;;  %s1002_s20 = sld [smem:[#allocation5 + %s183_s19]]  ;;  %s1000_s18 = int_to_ptr.vmem [resolvable:$true] %s179_s18 }
  0x2f   : > { %s200_s25 = sadd.s32 2, %s992_s14  ;;  %s883_s27 = smov [#allocation2 + $0x1]  }
  0x30   : > { %s196_s28 = sshll.u32 %s883_s27, 4  ;;  %s1005_s7 = sld [smem:[#allocation5 + %s200_s25]]  ;;  %s1007_s28 = int_to_ptr.vmem [resolvable:$true] %s196_s28 }
  0x31   : > { %s1015_s13 = scalar_lea.hbm %s1166_s1, 1024 }
  0x32   : > { %s503_s0 = sshll.u32 %s169_s16, 4 }
  0x33   : > { %s171_s10 = scalar_lea.hbm %s1166_s1, %s503_s0 }
  0x34   : > { %s620_s11 = scalar_lea.hbm %s171_s10, 16  ;;  %p623_p8 = scmp.lt.s32.totalorder %s171_s10, %s1166_s1 }
  0x35   : > { %p621_p6 = scmp.ne.s32.totalorder %s171_s10, %s620_s11  ;;  %p624_p9 = scmp.lt.s32.totalorder %s1015_s13, %s620_s11 }
  0x37   : > { %p625_p10 = por %p624_p9, %p623_p8 }
  0x39   : > { %p626_p11 = pnand %p625_p10, %p621_p6 }
  0x3b   : > { %629 = shalt.err (!%p626_p11)  }
  0x3c   : > { %s630_s16 = scalar_lea.vmem %s1000_s18, 16  ;;  %s1024_s25 = scalar_lea.vmem %s1000_s18, 128 }
  0x3d   : > { %p631_p12 = scmp.ne.s32.totalorder %s1000_s18, %s630_s16  ;;  %p635_p13 = scmp.lt.s32.totalorder %s1000_s18, %s1000_s18 }
  0x3e   : > { %p636_p0 = scmp.lt.s32.totalorder %s1024_s25, %s630_s16 }
  0x40   : > { %p637_p1 = por %p636_p0, %p635_p13 }
  0x42   : > { %p638_p2 = pnand %p637_p1, %p631_p12 }
  0x44   : > { %641 = shalt.err (!%p638_p2)  }
  0x45   : > { %182 = dma.hbm_to_vmem [thread:$0]  %s171_s10, 16, %s1000_s18, [#allocation3] }
  0x46   : > { %s504_s2 = sshll.u32 %s1002_s20, 4  ;;  %s884_s27 = smov [#allocation2 + $0x2]  }
  0x47   : > { %s213_s0 = sshll.u32 %s884_s27, 4  ;;  %s186_s11 = scalar_lea.hbm %s1166_s1, %s504_s2  ;;  %s1034_s0 = int_to_ptr.vmem [resolvable:$true] %s213_s0 }
  0x48   : > { %s642_s12 = scalar_lea.hbm %s186_s11, 16  ;;  %p645_p4 = scmp.lt.s32.totalorder %s186_s11, %s1166_s1 }
  0x49   : > { %p643_p3 = scmp.ne.s32.totalorder %s186_s11, %s642_s12  ;;  %p646_p7 = scmp.lt.s32.totalorder %s1015_s13, %s642_s12 }
  0x4b   : > { %p647_p6 = por %p646_p7, %p645_p4 }
  0x4d   : > { %p648_p8 = pnand %p647_p6, %p643_p3 }
  0x4f   : > { %651 = shalt.err (!%p648_p8)  }
  0x50   : > { %s652_s20 = scalar_lea.vmem %s1007_s28, 16  ;;  %p657_p10 = scmp.lt.s32.totalorder %s1007_s28, %s1000_s18 }
  0x51   : > { %p653_p9 = scmp.ne.s32.totalorder %s1007_s28, %s652_s20  ;;  %p658_p11 = scmp.lt.s32.totalorder %s1024_s25, %s652_s20 }
  0x53   : > { %p659_p12 = por %p658_p11, %p657_p10 }
  0x55   : > { %p660_p13 = pnand %p659_p12, %p653_p9 }
  0x57   : > { %663 = shalt.err (!%p660_p13)  }
  0x58   : > { %199 = dma.hbm_to_vmem [thread:$0]  %s186_s11, 16, %s1007_s28, [#allocation3 + $0x1] }
  0x59   : > { %s505_s10 = sshll.u32 %s1005_s7, 4  ;;  %s217_s16 = sadd.s32 3, %s992_s14 }
  0x5a   : > { %s203_s8 = scalar_lea.hbm %s1166_s1, %s505_s10  ;;  %s218_s9 = sld [smem:[#allocation5 + %s217_s16]] }
  0x5b   : > { %s664_s12 = scalar_lea.hbm %s203_s8, 16  ;;  %p667_p1 = scmp.lt.s32.totalorder %s203_s8, %s1166_s1 }
  0x5c   : > { %p665_p0 = scmp.ne.s32.totalorder %s203_s8, %s664_s12  ;;  %p668_p2 = scmp.lt.s32.totalorder %s1015_s13, %s664_s12 }
  0x5e   : > { %p669_p3 = por %p668_p2, %p667_p1 }
  0x60   : > { %p670_p4 = pnand %p669_p3, %p665_p0 }
  0x62   : > { %673 = shalt.err (!%p670_p4)  }
  0x63   : > { %s674_s28 = scalar_lea.vmem %s1034_s0, 16  ;;  %p679_p6 = scmp.lt.s32.totalorder %s1034_s0, %s1000_s18 }
  0x64   : > { %p675_p7 = scmp.ne.s32.totalorder %s1034_s0, %s674_s28  ;;  %p680_p8 = scmp.lt.s32.totalorder %s1024_s25, %s674_s28 }
  0x66   : > { %p681_p9 = por %p680_p8, %p679_p6 }
  0x68   : > { %p682_p10 = pnand %p681_p9, %p675_p7 }
  0x6a   : > { %685 = shalt.err (!%p682_p10)  }
  0x6b   : > { %216 = dma.hbm_to_vmem [thread:$0]  %s203_s8, 16, %s1034_s0, [#allocation3 + $0x2] }
  0x6c   : > { %s234_s7 = sadd.s32 4, %s992_s14  ;;  %s885_s11 = smov [#allocation2 + $0x3]  }
  0x6d   : > { %s230_s20 = sshll.u32 %s885_s11, 4  ;;  %s235_s10 = sld [smem:[#allocation5 + %s234_s7]]  ;;  %s231_s20 = int_to_ptr.vmem [resolvable:$true] %s230_s20 }
  0x6e   : > { %s886_s16 = smov [#allocation2 + $0x4]   ;;  %s251_s27 = sadd.s32 5, %s992_s14 }
  0x6f   : > { %s247_s2 = sshll.u32 %s886_s16, 4  ;;  %s506_s12 = sshll.u32 %s218_s9, 4  ;;  %s1063_s2 = int_to_ptr.vmem [resolvable:$true] %s247_s2 }
  0x70   : > { %s220_s28 = scalar_lea.hbm %s1166_s1, %s506_s12  ;;  %s1068_s29 = sld [smem:[#allocation5 + %s251_s27]] }
  0x71   : > { %s686_s23 = scalar_lea.hbm %s220_s28, 16  ;;  %p689_p12 = scmp.lt.s32.totalorder %s220_s28, %s1166_s1 }
  0x72   : > { %p687_p11 = scmp.ne.s32.totalorder %s220_s28, %s686_s23  ;;  %p690_p13 = scmp.lt.s32.totalorder %s1015_s13, %s686_s23 }
  0x74   : > { %p691_p0 = por %p690_p13, %p689_p12 }
  0x76   : > { %p692_p1 = pnand %p691_p0, %p687_p11 }
  0x78   : > { %695 = shalt.err (!%p692_p1)  }
  0x79   : > { %s696_s7 = scalar_lea.vmem %s231_s20, 16  ;;  %p701_p3 = scmp.lt.s32.totalorder %s231_s20, %s1000_s18 }
  0x7a   : > { %p697_p2 = scmp.ne.s32.totalorder %s231_s20, %s696_s7  ;;  %p702_p4 = scmp.lt.s32.totalorder %s1024_s25, %s696_s7 }
  0x7c   : > { %p703_p7 = por %p702_p4, %p701_p3 }
  0x7e   : > { %p704_p6 = pnand %p703_p7, %p697_p2 }
  0x80   : > { %707 = shalt.err (!%p704_p6)  }
  0x81   : > { %233 = dma.hbm_to_vmem [thread:$0]  %s220_s28, 16, %s231_s20, [#allocation3 + $0x3] }
  0x82   : > { %s507_s9 = sshll.u32 %s235_s10, 4  ;;  %s887_s23 = smov [#allocation2 + $0x5]  }
  0x83   : > { %s237_s27 = scalar_lea.hbm %s1166_s1, %s507_s9  ;;  %s264_s12 = sshll.u32 %s887_s23, 4  ;;  %s265_s12 = int_to_ptr.vmem [resolvable:$true] %s264_s12 }
  0x84   : > { %s708_s17 = scalar_lea.hbm %s237_s27, 16  ;;  %p711_p9 = scmp.lt.s32.totalorder %s237_s27, %s1166_s1 }
  0x85   : > { %p709_p8 = scmp.ne.s32.totalorder %s237_s27, %s708_s17  ;;  %p712_p10 = scmp.lt.s32.totalorder %s1015_s13, %s708_s17 }
  0x87   : > { %p713_p11 = por %p712_p10, %p711_p9 }
  0x89   : > { %p714_p12 = pnand %p713_p11, %p709_p8 }
  0x8b   : > { %717 = shalt.err (!%p714_p12)  }
  0x8c   : > { %s718_s20 = scalar_lea.vmem %s1063_s2, 16  ;;  %p723_p0 = scmp.lt.s32.totalorder %s1063_s2, %s1000_s18 }
  0x8d   : > { %p719_p13 = scmp.ne.s32.totalorder %s1063_s2, %s718_s20  ;;  %p724_p1 = scmp.lt.s32.totalorder %s1024_s25, %s718_s20 }
  0x8f   : > { %p725_p2 = por %p724_p1, %p723_p0 }
  0x91   : > { %p726_p3 = pnand %p725_p2, %p719_p13 }
  0x93   : > { %729 = shalt.err (!%p726_p3)  }
  0x94   : > { %250 = dma.hbm_to_vmem [thread:$0]  %s237_s27, 16, %s1063_s2, [#allocation3 + $0x4] }
  0x95   : > { %s268_s10 = sadd.s32 6, %s992_s14  ;;  %s508_s28 = sshll.u32 %s1068_s29, 4 }
  0x96   : > { %s269_s8 = sld [smem:[#allocation5 + %s268_s10]]  ;;  %s254_s11 = scalar_lea.hbm %s1166_s1, %s508_s28 }
  0x97   : > { %s730_s16 = scalar_lea.hbm %s254_s11, 16  ;;  %p733_p7 = scmp.lt.s32.totalorder %s254_s11, %s1166_s1 }
  0x98   : > { %p731_p4 = scmp.ne.s32.totalorder %s254_s11, %s730_s16  ;;  %p734_p6 = scmp.lt.s32.totalorder %s1015_s13, %s730_s16 }
  0x9a   : > { %p735_p8 = por %p734_p6, %p733_p7 }
  0x9c   : > { %p736_p9 = pnand %p735_p8, %p731_p4 }
  0x9e   : > { %739 = shalt.err (!%p736_p9)  }
  0x9f   : > { %s740_s19 = scalar_lea.vmem %s265_s12, 16  ;;  %p745_p11 = scmp.lt.s32.totalorder %s265_s12, %s1000_s18 }
  0xa0   : > { %p741_p10 = scmp.ne.s32.totalorder %s265_s12, %s740_s19  ;;  %p746_p12 = scmp.lt.s32.totalorder %s1024_s25, %s740_s19 }
  0xa2   : > { %p747_p13 = por %p746_p12, %p745_p11 }
  0xa4   : > { %p748_p0 = pnand %p747_p13, %p741_p10 }
  0xa6   : > { %751 = shalt.err (!%p748_p0)  }
  0xa7   : > { %267 = dma.hbm_to_vmem [thread:$0]  %s254_s11, 16, %s265_s12, [#allocation3 + $0x5] }
  0xa8   : > { %s888_s29 = smov [#allocation2 + $0x6]   ;;  %s285_s27 = sadd.s32 7, %s992_s14 }
  0xa9   : > { %s281_s2 = sshll.u32 %s888_s29, 4  ;;  %s286_s0 = sld [smem:[#allocation5 + %s285_s27]]  ;;  %s282_s2 = int_to_ptr.vmem [resolvable:$true] %s281_s2 }
  0xaa   : > { %s509_s20 = sshll.u32 %s269_s8, 4  ;;  %s889_s10 = smov [#allocation2 + $0x7]  }
  0xab   : > { %s298_s28 = sshll.u32 %s889_s10, 4  ;;  %s271_s16 = scalar_lea.hbm %s1166_s1, %s509_s20  ;;  %s299_s28 = int_to_ptr.vmem [resolvable:$true] %s298_s28 }
  0xac   : > { %s752_s23 = scalar_lea.hbm %s271_s16, 16  ;;  %p755_p2 = scmp.lt.s32.totalorder %s271_s16, %s1166_s1 }
  0xad   : > { %p753_p1 = scmp.ne.s32.totalorder %s271_s16, %s752_s23  ;;  %p756_p3 = scmp.lt.s32.totalorder %s1015_s13, %s752_s23 }
  0xaf   : > { %p757_p4 = por %p756_p3, %p755_p2 }
  0xb1   : > { %p758_p7 = pnand %p757_p4, %p753_p1 }
  0xb3   : > { %761 = shalt.err (!%p758_p7)  }
  0xb4   : > { %s762_s12 = scalar_lea.vmem %s282_s2, 16  ;;  %p767_p8 = scmp.lt.s32.totalorder %s282_s2, %s1000_s18 }
  0xb5   : > { %p763_p6 = scmp.ne.s32.totalorder %s282_s2, %s762_s12  ;;  %p768_p9 = scmp.lt.s32.totalorder %s1024_s25, %s762_s12 }
  0xb7   : > { %p769_p10 = por %p768_p9, %p767_p8 }
  0xb9   : > { %p770_p11 = pnand %p769_p10, %p763_p6 }
  0xbb   : > { %773 = shalt.err (!%p770_p11)  }
  0xbc   : > { %284 = dma.hbm_to_vmem [thread:$0]  %s271_s16, 16, %s282_s2, [#allocation3 + $0x6] }
  0xbd   : > { %s510_s8 = sshll.u32 %s286_s0, 4 }
  0xbe   : > { %s288_s27 = scalar_lea.hbm %s1166_s1, %s510_s8 }
  0xbf   : > { %s774_s20 = scalar_lea.hbm %s288_s27, 16  ;;  %p777_p13 = scmp.lt.s32.totalorder %s288_s27, %s1166_s1 }
  0xc0   : > { %p775_p12 = scmp.ne.s32.totalorder %s288_s27, %s774_s20  ;;  %p778_p0 = scmp.lt.s32.totalorder %s1015_s13, %s774_s20 }
  0xc2   : > { %p779_p1 = por %p778_p0, %p777_p13 }
  0xc4   : > { %p780_p2 = pnand %p779_p1, %p775_p12 }
  0xc6   : > { %783 = shalt.err (!%p780_p2)  }
  0xc7   : > { %s784_s9 = scalar_lea.vmem %s299_s28, 16  ;;  %p789_p4 = scmp.lt.s32.totalorder %s299_s28, %s1000_s18 }
  0xc8   : > { %p785_p3 = scmp.ne.s32.totalorder %s299_s28, %s784_s9  ;;  %p790_p7 = scmp.lt.s32.totalorder %s1024_s25, %s784_s9 }
  0xca   : > { %p791_p6 = por %p790_p7, %p789_p4 }
  0xcc   : > { %p792_p8 = pnand %p791_p6, %p785_p3 }
  0xce   : > { %795 = shalt.err (!%p792_p8)  }
  0xcf   : > { %301 = dma.hbm_to_vmem [thread:$0]  %s288_s27, 16, %s299_s28, [#allocation3 + $0x7] }
  0xd0   : > { %s167_s2 = scalar_lea.vmem [#allocation9], %s996_s15 }
  0xd1   : > { %844 = dma.done.wait [#allocation3], 16 }
  0xd2   : > { %845 = vsyncadd [#allocation3], 4294967280 }
  0xd3   : > { %846 = dma.done.wait [#allocation3 + $0x1], 16 }
  0xd4   : > { %847 = vsyncadd [#allocation3 + $0x1], 4294967280 }
  0xd5   : > { %848 = dma.done.wait [#allocation3 + $0x2], 16 }
  0xd6   : > { %849 = vsyncadd [#allocation3 + $0x2], 4294967280 }
  0xd7   : > { %850 = dma.done.wait [#allocation3 + $0x3], 16 }
  0xd8   : > { %851 = vsyncadd [#allocation3 + $0x3], 4294967280 }
  0xd9   : > { %852 = dma.done.wait [#allocation3 + $0x4], 16 }
  0xda   : > { %853 = vsyncadd [#allocation3 + $0x4], 4294967280 }
  0xdb   : > { %854 = dma.done.wait [#allocation3 + $0x5], 16 }
  0xdc   : > { %855 = vsyncadd [#allocation3 + $0x5], 4294967280 }
  0xdd   : > { %856 = dma.done.wait [#allocation3 + $0x6], 16 }
  0xde   : > { %857 = vsyncadd [#allocation3 + $0x6], 4294967280 }
  0xdf   : > { %858 = dma.done.wait [#allocation3 + $0x7], 16 }
  0xe0   : > { %859 = vsyncadd [#allocation3 + $0x7], 4294967280  ;;  %v319_v0 = vld [vmem:[#allocation2] sm:$0xff]  ;;  %v320_v1 = vld [vmem:[#allocation6] sm:$0xff]  ;;  %s366_s28 = sshll.u32 %s167_s2, 4  ;;  %s364_s17 = scalar_lea.hbm %s1170_s5, %s992_s14  ;;  %s367_s28 = int_to_ptr.vmem [resolvable:$true] %s366_s28 }
  0xe1   : > { %v321_v2 = vadd.f32 %v320_v1, %v319_v0  ;;  %v511_v13 = vld [vmem:[%s1168_s3] ss:$0 sm:$0xff]  ;;  %s1180_s19 = sand.u32 1, %s870_s22   ;;  %s796_s8 = scalar_lea.vmem %s367_s28, 128 }
  0xe2   : > { %v512_v15 = vld [vmem:[%s1169_s4] ss:$0 sm:$0xff]  ;;  %s353_s12 = scalar_lea.sflag [#allocation8], %s1180_s19  ;;  %p797_p9 = scmp.ne.s32.totalorder %s367_s28, %s796_s8 }
  0xe3   : > { %322 = vadd.xlane.f32.xlu0 %v321_v2  ;;  %v325_v3 = vmul.f32 %v321_v2, %v321_v2  ;;  %s890_s11 = smov [#allocation9]  }
  0xe4   : > { %p798_p10 = pnand %p797_p9, %p962_p5  ;;  %s800_s29 = sshll.u32 %s890_s11, 4  ;;  %s801_s29 = int_to_ptr.vmem [resolvable:$false] %s800_s29 }
  0xe5   : > { %s802_s27 = scalar_lea.vmem %s801_s29, 256  ;;  %p803_p12 = scmp.lt.s32.totalorder %s367_s28, %s801_s29 }
  0xe6   : > { %p799_p11 = pneg %p798_p10  ;;  %p804_p13 = scmp.lt.s32.totalorder %s802_s27, %s796_s8 }
  0xe7   : > { %326 = vadd.xlane.f32.xlu0 %v325_v3 }
  0xe8   : > { %p805_p0 = por %p804_p13, %p803_p12 }
  0xea   : > { %p806_p1 = pnand %p805_p0, %p799_p11 }
 0x16c   : > { %v323_v4 = vpop.xlane.xlu0 %322 }
 0x16d   : > { %v324_v5 = vmul.f32 0.0078125, %v323_v4 }
 0x16f   : > { %v329_v7 = vmul.f32 %v324_v5, %v324_v5  ;;  %v331_v11 = vsub.f32 %v321_v2, %v324_v5 }
 0x170   : > { %v327_v6 = vpop.xlane.xlu0 %326 }
 0x171   : > { %v328_v8 = vmul.f32 0.0078125, %v327_v6 }
 0x173   : > { %v330_v9 = vsub.f32 %v328_v8, %v329_v7 }
 0x175   : > { %v332_v10 = vadd.f32 1e-05, %v330_v9 }
 0x177   : > { %584 = vrsqrt.f32 %v332_v10 }
 0x184   : > { %v585_v12 = vpop.eup %584 }
 0x185   : > { %v334_v14 = vmul.f32 %v585_v12, %v331_v11 }
 0x187   : > { %v342_v16 = vmul.f32 %v511_v13, %v334_v14 }
 0x189   : > { %v350_v17 = vadd.f32 %v512_v15, %v342_v16 }
 0x18b   : > { %351 = vst [vmem:[%s167_s2] sm:$0xff] %v350_v17 }
 0x18c   : > { %809 = shalt.err (!%p806_p1)
}
 0x18d   : > { %s810_s14 = scalar_lea.hbm %s364_s17, 128  ;;  %s814_s10 = scalar_lea.hbm %s1170_s5, 256 }
 0x18e   : > { %p811_p2 = scmp.ne.s32.totalorder %s364_s17, %s810_s14  ;;  %p815_p7 = scmp.lt.s32.totalorder %s364_s17, %s1170_s5 }
 0x18f   : > { %p816_p6 = scmp.lt.s32.totalorder %s814_s10, %s810_s14 }
 0x190   : > { %p812_p3 = pnand %p811_p2, %p962_p5 }
 0x191   : > { %p817_p8 = por %p816_p6, %p815_p7 }
 0x192   : > { %p813_p4 = pneg %p812_p3 }
 0x194   : > { %p818_p9 = pnand %p817_p8, %p813_p4 }
 0x196   : > { %821 = shalt.err (!%p818_p9)
}
 0x197   : > { %529 = dma.vmem_to_hbm [thread:$0]  (%p962_p5), %s367_s28, 128, %s364_s17, %s353_s12  }
 0x198 PF: > { %p541_p10 = scmp.ge.s32.totalorder %s878_s24, 2  ;;  %s378_s2 = sand.u32 1, %s866_s21  }
 0x199   : > { %p1181_p11 = scmp.ne.s32.totalorder %s1177_s6, 0  ;;  %s379_s13 = scalar_lea.sflag [#allocation8], %s378_s2 }
 0x19b   : > { %p536_p12 = pnand %p541_p10, %p1181_p11 }
 0x19d   : > { %p537_p13 = pneg %p536_p12 }
 0x19f   : > { %861 = dma.done.wait (%p537_p13), %s379_s13, 128  }
 0x1a0   : > { %863 = vsyncadd (%p537_p13), %s379_s13, 4294967168  ;;  %s1182_s18 = sld [smem:[#allocation39_spill]]  ;;  %p20_p0 = scmp.ge.s32.totalorder %s949_s26, 4  }
 0x1a1   : > { %s1183_s23 = sld [smem:[#allocation40_spill]]  ;;  %s1184_s21 = smov %s870_s22 }
 0x1a2   : > { %s1186_s24 = smov %s949_s26  ;;  %22 = sbr.rel (!%p20_p0) target bundleno = 10 (0xa), region = 130 }
 0x1a6   : > { %s1185_s22 = smov %s1182_s18 }
 0x1a7   :  { %384 = vsyncpa [#allocation7], 1 }
 0x1a8   :  { %386 = vsyncpa [#allocation7 + $0x1], 1 }
 0x1a9   :  { %387 = vsyncpa [#allocation8], 1 }
 0x1aa   :  { %389 = vsyncpa [#allocation8 + $0x1], 1 }
 0x1ab   :  { %390 = vsyncmov [#allocation3] }
 0x1ae   :  { %s391_s24 = vpop.sfrf %390 }
 0x1af   :  { %p517_p5 = scmp.ne.s32.totalorder %s391_s24, 0 }
 0x1b1   :  { %395 = shalt.err (%p517_p5)  }
 0x1b2   :  { %397 = vsyncmov [#allocation3 + $0x1] }
 0x1b5   :  { %s398_s30 = vpop.sfrf %397 }
 0x1b6   :  { %p518_p1 = scmp.ne.s32.totalorder %s398_s30, 0 }
 0x1b8   :  { %402 = shalt.err (%p518_p1)  }
 0x1b9   :  { %404 = vsyncmov [#allocation3 + $0x2] }
 0x1bc   :  { %s405_s6 = vpop.sfrf %404 }
 0x1bd   :  { %p519_p2 = scmp.ne.s32.totalorder %s405_s6, 0 }
 0x1bf   :  { %409 = shalt.err (%p519_p2)  }
 0x1c0   :  { %411 = vsyncmov [#allocation3 + $0x3] }
 0x1c3   :  { %s412_s25 = vpop.sfrf %411 }
 0x1c4   :  { %p520_p3 = scmp.ne.s32.totalorder %s412_s25, 0 }
 0x1c6   :  { %416 = shalt.err (%p520_p3)  }
 0x1c7   :  { %418 = vsyncmov [#allocation3 + $0x4] }
 0x1ca   :  { %s419_s1 = vpop.sfrf %418 }
 0x1cb   :  { %p521_p4 = scmp.ne.s32.totalorder %s419_s1, 0 }
 0x1cd   :  { %423 = shalt.err (%p521_p4)  }
 0x1ce   :  { %425 = vsyncmov [#allocation3 + $0x5] }
 0x1d1   :  { %s426_s3 = vpop.sfrf %425 }
 0x1d2   :  { %p522_p7 = scmp.ne.s32.totalorder %s426_s3, 0 }
 0x1d4   :  { %430 = shalt.err (%p522_p7)  }
 0x1d5   :  { %432 = vsyncmov [#allocation3 + $0x6] }
 0x1d8   :  { %s433_s4 = vpop.sfrf %432 }
 0x1d9   :  { %p523_p6 = scmp.ne.s32.totalorder %s433_s4, 0 }
 0x1db   :  { %437 = shalt.err (%p523_p6)  }
 0x1dc   :  { %439 = vsyncmov [#allocation3 + $0x7] }
 0x1df   :  { %s440_s5 = vpop.sfrf %439 }
 0x1e0   :  { %p524_p8 = scmp.ne.s32.totalorder %s440_s5, 0 }
 0x1e2   :  { %444 = shalt.err (%p524_p8)  }

</bundles_post_ra>
